<compile_context>
chip_gen: v7x
topology: tpu7x:2x2x1
jax: 0.10.0
libtpu: 0.0.40
codegen_flags: <defaults>
</compile_context>

<pallas_src>
import functools

import jax
import jax.numpy as jnp
from jax import lax
from jax.experimental import pallas as pl
from jax.experimental.pallas import tpu as pltpu


def _vmem_capacity_bytes():
    """Physical VMEM of the local chip; conservative fallback = v7x per-TC."""
    try:
        info = pltpu.get_tpu_info()
        cap = int(getattr(info, "vmem_capacity_bytes"))
        if cap > 0:
            return cap
    except Exception:
        pass
    return 64 * 1024 * 1024


def _num_tensorcores_per_chip():
    """2 on v7x (2 TCs/chip, each with its own VMEM + HBM path), else 1."""
    try:
        kind = jax.devices()[0].device_kind.lower()
    except Exception:
        return 1
    return 2 if "v7" in kind else 1


def _dice_partial_kernel(o_ref, l_ref, inter_ref, summ_ref, *,
                         rows_total, tile_rows, steps_per_core,
                         needs_mask, full_steps):
    """Accumulate per-(core, batch) lane-partial intersection/summation sums.

    o_ref, l_ref : (B, tile_rows, 128) input blocks (original dtype)
    inter_ref    : (B, 128) f32 resident accumulator for this core's slab
    summ_ref     : (B, 128) f32 resident accumulator for this core's slab
    """
    core = pl.program_id(0)
    step = pl.program_id(1)

    @pl.when(step == 0)
    def _():
        inter_ref[...] = jnp.zeros_like(inter_ref)
        summ_ref[...] = jnp.zeros_like(summ_ref)

    o = o_ref[...]
    l = l_ref[...]
    if o.dtype != jnp.bfloat16:
        # f32/int inputs (and v5e, which has no bf16 VALU): promote up front.
        # bf16 inputs stay bf16 through the elementwise multiply (v6e/v7x VPU
        # handles bf16 natively); accumulation below is always f32.
        o = o.astype(jnp.float32)
        l = l.astype(jnp.float32)

    def accumulate(ov, lv):
        prod = ov * lv
        # Reduce only over the sublane/rows axis each step; the cross-lane
        # reduce is deferred to the tiny JAX epilogue.  summation uses
        # sum(o)+sum(l) so no full-block elementwise add is needed.
        inter_ref[...] += jnp.sum(prod, axis=1, dtype=jnp.float32)
        summ_ref[...] += (jnp.sum(ov, axis=1, dtype=jnp.float32)
                          + jnp.sum(lv, axis=1, dtype=jnp.float32))

    if not needs_mask:
        # Grid exactly covers rows_total: single clean path, no iota/select.
        accumulate(o, l)
    else:
        global_step = core * steps_per_core + step
        is_clean = global_step < full_steps

        @pl.when(is_clean)
        def _():
            accumulate(o, l)

        @pl.when(jnp.logical_not(is_clean))
        def _():
            # Partial last block (and any redundant fully-OOB steps from the
            # per-core split): zero rows past the valid range before use.
            rem = rows_total - global_step * tile_rows
            row_ids = lax.broadcasted_iota(jnp.int32, o.shape, 1)
            valid = row_ids < rem
            zero = jnp.zeros((), dtype=o.dtype)
            accumulate(jnp.where(valid, o, zero), jnp.where(valid, l, zero))


def _dice_loss_jnp(o2, l2, smooth):
    o = o2.astype(jnp.float32)
    l = l2.astype(jnp.float32)
    inter = jnp.sum(o * l, axis=1)
    summ = jnp.sum(o + l, axis=1)
    dice = (2.0 * inter + smooth) / (summ + smooth)
    return 1.0 - jnp.mean(dice)


def dice_loss(outputs, labels, smooth=1e-6, *, tile_rows=None,
              force_pallas=False):
    """Pallas implementation of DiceLoss.forward.

    outputs, labels: arrays of identical shape (B, ...) — e.g. NCHW.
    Returns a scalar float32 loss.
    """
    assert outputs.shape == labels.shape
    B = outputs.shape[0]
    o2 = outputs.reshape(B, -1)   # view-only reshape, keeps original dtype
    l2 = labels.reshape(B, -1)
    N = o2.shape[1]
    itemsize = jnp.dtype(outputs.dtype).itemsize

    # Small-input fast path: fixed pallas_call launch/DMA setup dominates for
    # tiny tensors; XLA's fused reduction wins there.
    if not force_pallas and B * N * itemsize < (1 << 20):
        return _dice_loss_jnp(o2, l2, smooth)

    # Lane alignment fallback (rare for CNN shapes; zero pad is neutral).
    # TODO(synk): when N % 128 != 0 this materializes padded copies (one extra
    # HBM pass); an in-kernel lane-masked tail block would avoid it.
    pad = (-N) % 128
    if pad:
        o2 = jnp.pad(o2, ((0, 0), (0, pad)))
        l2 = jnp.pad(l2, ((0, 0), (0, pad)))
    Np = N + pad
    rows_total = Np // 128
    o3 = o2.reshape(B, rows_total, 128)
    l3 = l2.reshape(B, rows_total, 128)

    # --- Per-generation streaming block sizing ---------------------------
    vmem_cap = _vmem_capacity_bytes()
    # 2 inputs x 2 pipeline buffers fit inside half the physical VMEM, with a
    # per-input block cap of 16 MiB (v5e/v6e: 16 MiB, v7x: 8 MiB).
    block_bytes_target = max(2 << 20, min((vmem_cap // 2) // 4, 16 << 20))
    if tile_rows is None:
        tile_rows = max(8, block_bytes_target // (B * 128 * itemsize))
    rows_rounded = ((rows_total + 7) // 8) * 8
    tile_rows = max(8, min(int(tile_rows), rows_rounded))
    tile_rows = (tile_rows // 8) * 8

    total_steps = pl.cdiv(rows_total, tile_rows)

    # v7x: split the row stream across both TensorCores via a leading
    # "parallel" grid axis (each core owns its own accumulator slab).
    num_cores = _num_tensorcores_per_chip()
    if total_steps < 2 * num_cores:
        num_cores = 1
    steps_per_core = pl.cdiv(total_steps, num_cores)

    needs_mask = num_cores * steps_per_core * tile_rows != rows_total
    full_steps = rows_total // tile_rows
    needs_clamp = num_cores * steps_per_core != total_steps

    def in_index_map(c, i):
        gs = c * steps_per_core + i
        if needs_clamp:
            # Redundant trailing steps (fully out-of-bounds after the per-core
            # split) re-read the last block; the kernel masks them to zero.
            gs = jnp.minimum(gs, total_steps - 1)
        return (0, gs, 0)

    kernel = functools.partial(
        _dice_partial_kernel,
        rows_total=rows_total, tile_rows=tile_rows,
        steps_per_core=steps_per_core,
        needs_mask=needs_mask, full_steps=full_steps)

    block_bytes = B * tile_rows * 128 * itemsize
    vmem_limit = int(min(vmem_cap, 4 * block_bytes + (8 << 20)))

    inter_p, summ_p = pl.pallas_call(
        kernel,
        out_shape=(
            jax.ShapeDtypeStruct((num_cores, B, 128), jnp.float32),
            jax.ShapeDtypeStruct((num_cores, B, 128), jnp.float32),
        ),
        grid_spec=pltpu.PrefetchScalarGridSpec(
            num_scalar_prefetch=0,
            grid=(num_cores, steps_per_core),
            in_specs=[
                pl.BlockSpec((B, tile_rows, 128), in_index_map),
                pl.BlockSpec((B, tile_rows, 128), in_index_map),
            ],
            out_specs=[
                pl.BlockSpec((None, B, 128), lambda c, i: (c, 0, 0)),
                pl.BlockSpec((None, B, 128), lambda c, i: (c, 0, 0)),
            ],
        ),
        compiler_params=pltpu.CompilerParams(
            dimension_semantics=("parallel", "arbitrary"),
            vmem_limit_bytes=vmem_limit,
        ),
        cost_estimate=pl.CostEstimate(
            flops=3 * B * Np,
            transcendentals=0,
            bytes_accessed=2 * B * Np * itemsize,
        ),
    )(o3, l3)

    # Tiny epilogue in plain JAX: reduce core slabs + lanes, dice, mean.
    intersection = jnp.sum(inter_p, axis=(0, 2))   # (B,)
    summation = jnp.sum(summ_p, axis=(0, 2))       # (B,)
    dice = (2.0 * intersection + smooth) / (summation + smooth)
    return 1.0 - jnp.mean(dice)


def dice_loss_ref(outputs, labels, smooth=1e-6):
    B = outputs.shape[0]
    return _dice_loss_jnp(outputs.reshape(B, -1), labels.reshape(B, -1), smooth)


if __name__ == "__main__":
    key = jax.random.PRNGKey(0)
    k1, k2 = jax.random.split(key)
    # NCHW inputs: batch=2, channels=4, spatial=16x16
    outputs = jax.nn.sigmoid(jax.random.normal(k1, (2, 4, 16, 16), jnp.float32))
    labels = (jax.random.uniform(k2, (2, 4, 16, 16)) > 0.5).astype(jnp.float32)

    # force_pallas=True so the small demo actually exercises the kernel
    # (production calls would take the jnp fast path for tiny inputs).
    loss = dice_loss(outputs, labels, force_pallas=True)
    loss = jax.block_until_ready(loss)

    ref = dice_loss_ref(outputs, labels)
    assert jnp.allclose(loss, ref, rtol=1e-5, atol=1e-6), (loss, ref)
    print("KERNEL_OK")
</pallas_src>

<mosaic_0001>
module attributes {stable_mosaic.version = 11 : i64} {
  func.func @_dice_partial_kernel(%arg0: i32, %arg1: i32, %arg2: memref<2x8x128xf32, #tpu.memory_space<vmem>>, %arg3: memref<2x8x128xf32, #tpu.memory_space<vmem>>, %arg4: memref<1x2x128xf32, #tpu.memory_space<vmem>>, %arg5: memref<1x2x128xf32, #tpu.memory_space<vmem>>) attributes {dimension_semantics = [#tpu.dimension_semantics<parallel>, #tpu.dimension_semantics<arbitrary>], iteration_bounds = array<i64: 1, 1>, scalar_prefetch = 0 : i64, scratch_operands = 0 : i64, tpu.core_type = #tpu.core_type<tc>, window_params = [{transform_indices = @transform_0, window_bounds = array<i64: 2, 8, 128>}, {transform_indices = @transform_1, window_bounds = array<i64: 2, 8, 128>}, {transform_indices = @transform_2, window_bounds = array<i64: 1, 2, 128>}, {transform_indices = @transform_3, window_bounds = array<i64: 1, 2, 128>}]} {
    %c0_i32 = arith.constant 0 : i32
    %0 = arith.cmpi eq, %arg1, %c0_i32 : i32
    %1 = arith.extui %0 : i1 to i32
    %c0_i32_0 = arith.constant 0 : i32
    %2 = arith.cmpi ne, %1, %c0_i32_0 : i32
    scf.if %2 {
      %cst_20 = arith.constant 0.000000e+00 : f32
      %22 = vector.broadcast %cst_20 : f32 to vector<2x128xf32>
      %c0_21 = arith.constant 0 : index
      %c0_22 = arith.constant 0 : index
      %c0_23 = arith.constant 0 : index
      %23 = vector.load %arg4[%c0_21, %c0_22, %c0_23] : memref<1x2x128xf32, #tpu.memory_space<vmem>>, vector<1x2x128xf32>
      %24 = vector.shape_cast %23 : vector<1x2x128xf32> to vector<2x128xf32>
      %25 = vector.shape_cast %22 : vector<2x128xf32> to vector<1x2x128xf32>
      tpu.vector_store %arg4[%c0_21, %c0_22, %c0_23], %25 {strides = array<i32>} : memref<1x2x128xf32, #tpu.memory_space<vmem>>, vector<1x2x128xf32>,
      %cst_24 = arith.constant 0.000000e+00 : f32
      %26 = vector.broadcast %cst_24 : f32 to vector<2x128xf32>
      %c0_25 = arith.constant 0 : index
      %c0_26 = arith.constant 0 : index
      %c0_27 = arith.constant 0 : index
      %27 = vector.load %arg5[%c0_25, %c0_26, %c0_27] : memref<1x2x128xf32, #tpu.memory_space<vmem>>, vector<1x2x128xf32>
      %28 = vector.shape_cast %27 : vector<1x2x128xf32> to vector<2x128xf32>
      %29 = vector.shape_cast %26 : vector<2x128xf32> to vector<1x2x128xf32>
      tpu.vector_store %arg5[%c0_25, %c0_26, %c0_27], %29 {strides = array<i32>} : memref<1x2x128xf32, #tpu.memory_space<vmem>>, vector<1x2x128xf32>,
    } else {
    }
    %c0 = arith.constant 0 : index
    %c0_1 = arith.constant 0 : index
    %c0_2 = arith.constant 0 : index
    %3 = vector.load %arg2[%c0, %c0_1, %c0_2] : memref<2x8x128xf32, #tpu.memory_space<vmem>>, vector<2x8x128xf32>
    %c0_3 = arith.constant 0 : index
    %c0_4 = arith.constant 0 : index
    %c0_5 = arith.constant 0 : index
    %4 = vector.load %arg3[%c0_3, %c0_4, %c0_5] : memref<2x8x128xf32, #tpu.memory_space<vmem>>, vector<2x8x128xf32>
    %5 = arith.mulf %3, %4 : vector<2x8x128xf32>
    %c0_6 = arith.constant 0 : index
    %c0_7 = arith.constant 0 : index
    %c0_8 = arith.constant 0 : index
    %6 = vector.load %arg4[%c0_6, %c0_7, %c0_8] : memref<1x2x128xf32, #tpu.memory_space<vmem>>, vector<1x2x128xf32>
    %7 = vector.shape_cast %6 : vector<1x2x128xf32> to vector<2x128xf32>
    %cst = arith.constant dense<0.000000e+00> : vector<2x128xf32>
    %8 = vector.multi_reduction <add>, %5, %cst [1] : vector<2x8x128xf32> to vector<2x128xf32>
    %9 = arith.addf %7, %8 : vector<2x128xf32>
    %c0_9 = arith.constant 0 : index
    %c0_10 = arith.constant 0 : index
    %c0_11 = arith.constant 0 : index
    %10 = vector.load %arg4[%c0_9, %c0_10, %c0_11] : memref<1x2x128xf32, #tpu.memory_space<vmem>>, vector<1x2x128xf32>
    %11 = vector.shape_cast %10 : vector<1x2x128xf32> to vector<2x128xf32>
    %12 = vector.shape_cast %9 : vector<2x128xf32> to vector<1x2x128xf32>
    tpu.vector_store %arg4[%c0_9, %c0_10, %c0_11], %12 {strides = array<i32>} : memref<1x2x128xf32, #tpu.memory_space<vmem>>, vector<1x2x128xf32>,
    %c0_12 = arith.constant 0 : index
    %c0_13 = arith.constant 0 : index
    %c0_14 = arith.constant 0 : index
    %13 = vector.load %arg5[%c0_12, %c0_13, %c0_14] : memref<1x2x128xf32, #tpu.memory_space<vmem>>, vector<1x2x128xf32>
    %14 = vector.shape_cast %13 : vector<1x2x128xf32> to vector<2x128xf32>
    %cst_15 = arith.constant dense<0.000000e+00> : vector<2x128xf32>
    %15 = vector.multi_reduction <add>, %3, %cst_15 [1] : vector<2x8x128xf32> to vector<2x128xf32>
    %cst_16 = arith.constant dense<0.000000e+00> : vector<2x128xf32>
    %16 = vector.multi_reduction <add>, %4, %cst_16 [1] : vector<2x8x128xf32> to vector<2x128xf32>
    %17 = arith.addf %15, %16 : vector<2x128xf32>
    %18 = arith.addf %14, %17 : vector<2x128xf32>
    %c0_17 = arith.constant 0 : index
    %c0_18 = arith.constant 0 : index
    %c0_19 = arith.constant 0 : index
    %19 = vector.load %arg5[%c0_17, %c0_18, %c0_19] : memref<1x2x128xf32, #tpu.memory_space<vmem>>, vector<1x2x128xf32>
    %20 = vector.shape_cast %19 : vector<1x2x128xf32> to vector<2x128xf32>
    %21 = vector.shape_cast %18 : vector<2x128xf32> to vector<1x2x128xf32>
    tpu.vector_store %arg5[%c0_17, %c0_18, %c0_19], %21 {strides = array<i32>} : memref<1x2x128xf32, #tpu.memory_space<vmem>>, vector<1x2x128xf32>,
    return
  }
  func.func @transform_0(%arg0: i32, %arg1: i32) -> (i32, i32, i32) {
    %c1_i32 = arith.constant 1 : i32
    %0 = arith.muli %arg0, %c1_i32 : i32
    %1 = arith.addi %0, %arg1 : i32
    %c0_i32 = arith.constant 0 : i32
    %c0_i32_0 = arith.constant 0 : i32
    %c0_i32_1 = arith.constant 0 : i32
    return %c0_i32, %1, %c0_i32_0 : i32, i32, i32
  }
  func.func @transform_1(%arg0: i32, %arg1: i32) -> (i32, i32, i32) {
    %c1_i32 = arith.constant 1 : i32
    %0 = arith.muli %arg0, %c1_i32 : i32
    %1 = arith.addi %0, %arg1 : i32
    %c0_i32 = arith.constant 0 : i32
    %c0_i32_0 = arith.constant 0 : i32
    %c0_i32_1 = arith.constant 0 : i32
    return %c0_i32, %1, %c0_i32_0 : i32, i32, i32
  }
  func.func @transform_2(%arg0: i32, %arg1: i32) -> (i32, i32, i32) {
    %c0_i32 = arith.constant 0 : i32
    %c0_i32_0 = arith.constant 0 : i32
    %c0_i32_1 = arith.constant 0 : i32
    return %arg0, %c0_i32, %c0_i32_0 : i32, i32, i32
  }
  func.func @transform_3(%arg0: i32, %arg1: i32) -> (i32, i32, i32) {
    %c0_i32 = arith.constant 0 : i32
    %c0_i32_0 = arith.constant 0 : i32
    %c0_i32_1 = arith.constant 0 : i32
    return %arg0, %c0_i32, %c0_i32_0 : i32, i32, i32
  }
}

</mosaic_0001>

<bundles_post_ra>
// kernel: tpu_custom_call.1
= control target key start
LH: loop header
LB: loop body
LE: loop exit
PB: predicated region body
PF: predicated region fallthrough
CT: control target
= control target key end

     0   :  { %9 = vsyncpa [#allocation3], 0  ;;  %s324_s0 = inlined_call_operand.hbm [shape: f32[2,8,128], index: 0, kind: input, shape index: {}]   ;;  %s325_s1 = inlined_call_operand.hbm [shape: f32[2,8,128], index: 1, kind: input, shape index: {}]   ;;  %s326_s2 = inlined_call_operand.hbm [shape: f32[1,2,128], index: 2, kind: output, shape index: {0}]   ;;  %s327_s3 = inlined_call_operand.hbm [shape: f32[1,2,128], index: 3, kind: output, shape index: {1}]  }
   0x1   :  { %10 = vsyncpa [#allocation6], 0 }
   0x2   :  { %11 = vsyncpa [#allocation4], 0 }
   0x3   :  { %12 = vsyncpa [#allocation9], 0  ;;  %s249_s12 = smov [#allocation2]   ;;  %s153_s16 = scalar_lea.hbm %s324_s0, 256 }
   0x4   :  { %s21_s13 = sshll.u32 %s249_s12, 4  ;;  %p154_p0 = scmp.ne.s32.totalorder %s324_s0, %s153_s16  ;;  %s22_s13 = int_to_ptr.vmem [resolvable:$true] %s21_s13 }
   0x5   :  { %p157_p1 = scmp.lt.u32.totalorder %s153_s16, %s324_s0 }
   0x7   :  { %p159_p2 = pnand %p157_p1, %p154_p0 }
   0x9   :  { %162 = shalt.err (!%p159_p2)
}
   0xa   :  { %s163_s21 = scalar_lea.vmem %s22_s13, 256  ;;  %p168_p4 = scmp.lt.s32.totalorder %s22_s13, %s22_s13 }
   0xb   :  { %p164_p3 = scmp.ne.s32.totalorder %s22_s13, %s163_s21  ;;  %p169_p5 = scmp.lt.s32.totalorder %s163_s21, %s163_s21 }
   0xd   :  { %p170_p6 = por %p169_p5, %p168_p4 }
   0xf   :  { %p171_p7 = pnand %p170_p6, %p164_p3 }
  0x11   :  { %174 = shalt.err (!%p171_p7)
}
  0x12   :  { %s250_s22 = smov 128   ;;  %s251_s23 = smov 8  }
  0x13   :  { %27 = dma.hbm_to_vmem [thread:$0]  %s324_s0, 256, %s22_s13, [#allocation3], %s250_s22, %s250_s22, %s251_s23  }
  0x14   :  { %s252_s26 = smov [#allocation5]   ;;  %s175_s30 = scalar_lea.hbm %s325_s1, 256 }
  0x15   :  { %s36_s27 = sshll.u32 %s252_s26, 4  ;;  %p176_p8 = scmp.ne.s32.totalorder %s325_s1, %s175_s30  ;;  %s37_s27 = int_to_ptr.vmem [resolvable:$true] %s36_s27 }
  0x16   :  { %p179_p9 = scmp.lt.u32.totalorder %s175_s30, %s325_s1 }
  0x18   :  { %p181_p10 = pnand %p179_p9, %p176_p8 }
  0x1a   :  { %184 = shalt.err (!%p181_p10)
}
  0x1b   :  { %s185_s8 = scalar_lea.vmem %s37_s27, 256  ;;  %p190_p12 = scmp.lt.s32.totalorder %s37_s27, %s37_s27 }
  0x1c   :  { %p186_p11 = scmp.ne.s32.totalorder %s37_s27, %s185_s8  ;;  %p191_p13 = scmp.lt.s32.totalorder %s185_s8, %s185_s8 }
  0x1e   :  { %p192_p0 = por %p191_p13, %p190_p12 }
  0x20   :  { %p193_p1 = pnand %p192_p0, %p186_p11 }
  0x22   :  { %196 = shalt.err (!%p193_p1)
}
  0x23   :  { %42 = dma.hbm_to_vmem [thread:$0]  %s325_s1, 256, %s37_s27, [#allocation6], %s250_s22, %s250_s22, %s251_s23  }
  0x24   :  { %241 = dma.done.wait [#allocation3], 256  }
  0x25   :  { %242 = vsyncadd [#allocation3], 4294967040 }
  0x26   :  { %243 = dma.done.wait [#allocation6], 256  }
  0x27   :  { %244 = vsyncadd [#allocation6], 4294967040  ;;  %v253_v0 = vmov 0.0   ;;  %v57_v1 = vld [vmem:[#allocation2] sm:$0xff]  ;;  %v58_v2 = vld [vmem:[#allocation2 + $0x8] sm:$0xff]  ;;  %vm78_vm0 = vcmask 1041409  }
  0x28   :  { %55 = vst [vmem:[#allocation7] sm:$0x3] %v253_v0  ;;  %56 = vst [vmem:[#allocation8] sm:$0x3] %v253_v0  ;;  %v59_v3 = vld [vmem:[#allocation5] sm:$0xff]  ;;  %v60_v4 = vld [vmem:[#allocation5 + $0x8] sm:$0xff] }
  0x29   :  { %v61_v5 = vmul.f32 %v59_v3, %v57_v1  ;;  %v84_v6 = vrot.slane %v57_v1, 4  ;;  %v62_v7 = vmul.f32 %v60_v4, %v58_v2  ;;  %v90_v8 = vrot.slane %v58_v2, 4  ;;  %s254_s1 = smov [#allocation7]   ;;  %s255_s11 = smov [#allocation8]  }
  0x2a   :  { %v96_v9 = vrot.slane %v59_v3, 4  ;;  %v102_v10 = vrot.slane %v60_v4, 4  ;;  %s122_s10 = sshll.u32 %s254_s1, 4  ;;  %s132_s12 = sshll.u32 %s255_s11, 4  ;;  %s123_s10 = int_to_ptr.vmem [resolvable:$true] %s122_s10  ;;  %s133_s12 = int_to_ptr.vmem [resolvable:$true] %s132_s12 }
  0x2b   :  { %v64_v11 = vrot.slane %v61_v5, 4  ;;  %v85_v12 = vadd.f32 %v84_v6, %v57_v1  ;;  %v70_v13 = vrot.slane %v62_v7, 4  ;;  %v91_v14 = vadd.f32 %v90_v8, %v58_v2  ;;  %s197_s13 = scalar_lea.vmem %s123_s10, 32  ;;  %p202_p3 = scmp.lt.s32.totalorder %s123_s10, %s123_s10 }
  0x2c   :  { %v97_v15 = vadd.f32 %v96_v9, %v59_v3  ;;  %v103_v16 = vadd.f32 %v102_v10, %v60_v4  ;;  %p198_p2 = scmp.ne.s32.totalorder %s123_s10, %s197_s13  ;;  %p203_p4 = scmp.lt.s32.totalorder %s197_s13, %s197_s13 }
  0x2d   :  { %v65_v17 = vadd.f32 %v64_v11, %v61_v5  ;;  %v86_v18 = vrot.slane %v85_v12, 2  ;;  %v71_v19 = vadd.f32 %v70_v13, %v62_v7  ;;  %v92_v20 = vrot.slane %v91_v14, 2 }
  0x2e   :  { %v98_v21 = vrot.slane %v97_v15, 2  ;;  %v104_v22 = vrot.slane %v103_v16, 2  ;;  %p204_p5 = por %p203_p4, %p202_p3 }
  0x2f   :  { %v66_v23 = vrot.slane %v65_v17, 2  ;;  %v87_v24 = vadd.f32 %v86_v18, %v85_v12  ;;  %v72_v25 = vrot.slane %v71_v19, 2  ;;  %v93_v26 = vadd.f32 %v92_v20, %v91_v14  ;;  %v63_v42 = vld [vmem:[#allocation7] sm:$0x3]  ;;  %v83_v44 = vld [vmem:[#allocation8] sm:$0x3] }
  0x30   :  { %v99_v27 = vadd.f32 %v98_v21, %v97_v15  ;;  %v105_v28 = vadd.f32 %v104_v22, %v103_v16  ;;  %p205_p6 = pnand %p204_p5, %p198_p2 }
  0x31   :  { %v67_v29 = vadd.f32 %v66_v23, %v65_v17  ;;  %v88_v30 = vrot.slane %v87_v24, 1  ;;  %v73_v31 = vadd.f32 %v72_v25, %v71_v19  ;;  %v94_v32 = vrot.slane %v93_v26, 1 }
  0x32   :  { %v100_v33 = vrot.slane %v99_v27, 1  ;;  %v106_v34 = vrot.slane %v105_v28, 1 }
  0x33   :  { %v68_v35 = vrot.slane %v67_v29, 1  ;;  %v89_v36 = vadd.f32 %v88_v30, %v87_v24  ;;  %v74_v37 = vrot.slane %v73_v31, 1  ;;  %v95_v38 = vadd.f32 %v94_v32, %v93_v26 }
  0x34   :  { %v101_v39 = vadd.f32 %v100_v33, %v99_v27  ;;  %v107_v40 = vadd.f32 %v106_v34, %v105_v28 }
  0x35   :  { %v69_v41 = vadd.f32 %v68_v35, %v67_v29  ;;  %v75_v43 = vadd.f32 %v74_v37, %v73_v31 }
  0x36   :  { %v108_v45 = vadd.f32 %v101_v39, %v89_v36  ;;  %v109_v46 = vadd.f32 %v107_v40, %v95_v38 }
  0x37   :  { %v79_v47 = vsel %vm78_vm0, %v75_v43, %v69_v41 }
  0x38   :  { %v112_v48 = vsel %vm78_vm0, %v109_v46, %v108_v45  ;;  %v81_v49 = vadd.f32 %v79_v47, %v63_v42 }
  0x39   :  { %v114_v50 = vadd.f32 %v112_v48, %v83_v44 }
  0x3a   :  { %82 = vst [vmem:[#allocation7] sm:$0x3] %v81_v49 }
  0x3b   :  { %115 = vst [vmem:[#allocation8] sm:$0x3] %v114_v50 }
  0x3c   :  { %208 = shalt.err (!%p205_p6)
}
  0x3d   :  { %s209_s16 = scalar_lea.hbm %s326_s2, 32 }
  0x3e   :  { %p210_p7 = scmp.ne.s32.totalorder %s326_s2, %s209_s16  ;;  %p213_p8 = scmp.lt.u32.totalorder %s209_s16, %s326_s2 }
  0x40   :  { %p215_p9 = pnand %p213_p8, %p210_p7 }
  0x42   :  { %218 = shalt.err (!%p215_p9)
}
  0x43   :  { %125 = dma.vmem_to_hbm [thread:$0]  %s123_s10, 32, %s326_s2, [#allocation4]  }
  0x44   :  { %s219_s23 = scalar_lea.vmem %s133_s12, 32  ;;  %p224_p11 = scmp.lt.s32.totalorder %s133_s12, %s133_s12 }
  0x45   :  { %p220_p10 = scmp.ne.s32.totalorder %s133_s12, %s219_s23  ;;  %p225_p12 = scmp.lt.s32.totalorder %s219_s23, %s219_s23 }
  0x47   :  { %p226_p13 = por %p225_p12, %p224_p11 }
  0x49   :  { %p227_p0 = pnand %p226_p13, %p220_p10 }
  0x4b   :  { %230 = shalt.err (!%p227_p0)
}
  0x4c   :  { %s231_s26 = scalar_lea.hbm %s327_s3, 32 }
  0x4d   :  { %p232_p1 = scmp.ne.s32.totalorder %s327_s3, %s231_s26  ;;  %p235_p2 = scmp.lt.u32.totalorder %s231_s26, %s327_s3 }
  0x4f   :  { %p237_p3 = pnand %p235_p2, %p232_p1 }
  0x51   :  { %240 = shalt.err (!%p237_p3)
}
  0x52   :  { %135 = dma.vmem_to_hbm [thread:$0]  %s133_s12, 32, %s327_s3, [#allocation9]  }
  0x53   :  { %245 = dma.done.wait [#allocation4], 32  }
  0x54   :  { %246 = vsyncadd [#allocation4], 4294967264 }
  0x55   :  { %247 = dma.done.wait [#allocation9], 32  }
  0x56   :  { %248 = vsyncadd [#allocation9], 4294967264 }
  0x57   :  { %142 = vsyncpa [#allocation3], 1 }
  0x58   :  { %143 = vsyncpa [#allocation6], 1 }
  0x59   :  { %144 = vsyncpa [#allocation4], 1 }
  0x5a   :  { %145 = vsyncpa [#allocation9], 1 }

</bundles_post_ra>
